<compile_context>
chip_gen: v6e
topology: v6e:2x2x1
jax: 0.10.0
libtpu: 0.0.40
codegen_flags: <defaults>
</compile_context>

<pallas_src>
import functools

import jax
import jax.numpy as jnp
from jax.experimental import pallas as pl
from jax.experimental.pallas import tpu as pltpu


def _slstm_kernel(x_ref, h_ref, wx_ref, wh_ref, b_ref, c_ref, n_ref, m_ref,
                  h_out, c_out, n_out, m_out, *, hidden_size: int):
    H = hidden_size

    # gates = x @ Wx + h @ Wh + B   (bf16 MXU operands, f32 accumulate)
    gates = jnp.dot(x_ref[...], wx_ref[...], preferred_element_type=jnp.float32)
    gates = gates + jnp.dot(h_ref[...], wh_ref[...], preferred_element_type=jnp.float32)
    gates = gates + b_ref[...]                        # [1, 4H] broadcasts over batch tile

    z_tilda = gates[:, 0 * H:1 * H]
    i_tilda = gates[:, 1 * H:2 * H]
    f_tilda = gates[:, 2 * H:3 * H]
    o_tilda = gates[:, 3 * H:4 * H]

    z_t = jnp.tanh(z_tilda)
    o_t = jax.nn.sigmoid(o_tilda)

    # forget gate + its log, sharing one exp:
    #   e        = exp(-|f|)
    #   log f_t  = log(sigmoid(f)) = min(f, 0) - log1p(e)       (numerically stable)
    #   f_t      = sigmoid(f)      = where(f>=0, 1, e) / (1+e)
    e = jnp.exp(-jnp.abs(f_tilda))
    log_f = jnp.minimum(f_tilda, 0.0) - jnp.log1p(e)
    f_t = jnp.where(f_tilda >= 0.0, 1.0, e) * pl.reciprocal(1.0 + e, approx=True)

    # stabilizer state: log(i_t) = log(exp(i_tilda)) == i_tilda
    m_t = jnp.maximum(log_f + m_ref[...], i_tilda)
    i_prime = jnp.exp(i_tilda - m_t)

    c_t = f_t * c_ref[...] + i_prime * z_t
    n_t = f_t * n_ref[...] + i_prime
    h_t = o_t * (c_t * pl.reciprocal(n_t, approx=True))

    # four direct lane-dense stores (no concat, no extra VMEM temporary)
    h_out[...] = h_t.astype(h_out.dtype)
    c_out[...] = c_t.astype(c_out.dtype)
    n_out[...] = n_t.astype(n_out.dtype)
    m_out[...] = m_t.astype(m_out.dtype)


def prepare_slstm_params(W, B, input_size):
    """Hoisted once-per-model param prep (split W, cast to bf16, reshape bias)."""
    Wx = W[:input_size].astype(jnp.bfloat16)          # [D, 4H]
    Wh = W[input_size:].astype(jnp.bfloat16)          # [H, 4H]
    bias2d = B.reshape(1, -1).astype(jnp.float32)     # [1, 4H]
    return Wx, Wh, bias2d


def _pick_batch_tile(batch):
    for cand in (256, 128, 64, 32, 16, 8):
        if batch % cand == 0:
            return cand
    return batch


def slstm_cell_forward(x, state, params, *, batch_tile=None):
    """Pallas implementation of sLSTMCell.forward.

    x:      [batch, input_size]                       (any float dtype; cast to bf16 here)
    state:  tuple (h, c, n, m), each [batch, hidden]  (f32)
    params: (Wx[D,4H] bf16, Wh[H,4H] bf16, bias[1,4H] f32) from prepare_slstm_params
    returns (h_t, (h_t, c_t, n_t, m_t)), each [batch, hidden] f32
    """
    Wx, Wh, bias2d = params
    h, c, n, m = state
    batch, hidden_size = h.shape
    input_size = x.shape[1]
    H = hidden_size

    tb = _pick_batch_tile(batch) if batch_tile is None else batch_tile
    assert batch % tb == 0, "batch must be divisible by batch_tile"
    grid = (batch // tb,)

    # bf16 matmul operands cast once here (halves their DMA bytes)
    x_bf = x.astype(jnp.bfloat16)
    h_bf = h.astype(jnp.bfloat16)

    # VMEM budget: single-buffered weights + double-buffered per-tile I/O + elementwise headroom
    w_bytes = Wx.size * 2 + Wh.size * 2 + bias2d.size * 4
    tile_in = tb * input_size * 2 + tb * H * 2 + 3 * tb * H * 4
    tile_out = 4 * tb * H * 4
    interm = 12 * tb * H * 4
    vmem_limit = int(min(max(w_bytes + 2 * (tile_in + tile_out) + interm + (4 << 20),
                             16 << 20), 64 << 20))

    row = lambda cols: pl.BlockSpec((tb, cols), lambda i: (i, 0))            # tiled over batch
    resident = lambda shape: pl.BlockSpec(shape, lambda i: (0, 0),
                                          pipeline_mode=pl.Buffered(1))      # constant block

    kernel = functools.partial(_slstm_kernel, hidden_size=H)

    out_sds = jax.ShapeDtypeStruct((batch, H), jnp.float32)
    h_t, c_t, n_t, m_t = pl.pallas_call(
        kernel,
        out_shape=(out_sds, out_sds, out_sds, out_sds),
        grid=grid,
        in_specs=[
            row(input_size),          # x   (bf16)
            row(H),                   # h   (bf16)
            resident(Wx.shape),       # Wx  (bf16, VMEM-resident, single-buffered)
            resident(Wh.shape),       # Wh
            resident(bias2d.shape),   # bias
            row(H),                   # c
            row(H),                   # n
            row(H),                   # m
        ],
        out_specs=(row(H), row(H), row(H), row(H)),
        compiler_params=pltpu.CompilerParams(
            dimension_semantics=("parallel",),
            vmem_limit_bytes=vmem_limit),
    )(x_bf, h_bf, Wx, Wh, bias2d, c, n, m)

    return h_t, (h_t, c_t, n_t, m_t)


def slstm_cell_ref(x, state, W, B):
    """Pure-JAX reference mirroring the PyTorch module literally (f32)."""
    h, c, n, m = state
    combined = jnp.concatenate([x, h], axis=1)
    gates = combined @ W + B
    H = h.shape[1]
    z_tilda, i_tilda, f_tilda, o_tilda = (gates[:, i * H:(i + 1) * H] for i in range(4))
    z_t = jnp.tanh(z_tilda)
    i_t = jnp.exp(i_tilda)
    f_t = jax.nn.sigmoid(f_tilda)
    o_t = jax.nn.sigmoid(o_tilda)
    m_t = jnp.maximum(jnp.log(f_t) + m, jnp.log(i_t))
    i_prime = jnp.exp(i_tilda - m_t)
    c_t = f_t * c + i_prime * z_t
    n_t = f_t * n + i_prime
    h_t = o_t * (c_t / n_t)
    return h_t, (h_t, c_t, n_t, m_t)


def _make_case(key, batch, input_size, hidden_size):
    k_w, k_x, k_h, k_c, k_n, k_m = jax.random.split(key, 6)
    fan_in, fan_out = input_size + hidden_size, 4 * hidden_size
    limit = (6.0 / (fan_in + fan_out)) ** 0.5
    W = jax.random.uniform(k_w, (fan_in, fan_out), jnp.float32, -limit, limit)
    B = jnp.zeros((fan_out,), jnp.float32)
    x = jax.random.normal(k_x, (batch, input_size), jnp.float32)
    h0 = jax.random.normal(k_h, (batch, hidden_size), jnp.float32) * 0.1
    c0 = jax.random.normal(k_c, (batch, hidden_size), jnp.float32) * 0.1
    n0 = jnp.abs(jax.random.normal(k_n, (batch, hidden_size), jnp.float32)) + 1.0
    m0 = jax.random.normal(k_m, (batch, hidden_size), jnp.float32) * 0.1
    return W, B, x, (h0, c0, n0, m0)


def _run_and_check(key, batch, input_size, hidden_size, atol, rtol):
    W, B, x, state = _make_case(key, batch, input_size, hidden_size)
    params = prepare_slstm_params(W, B, input_size)         # hoisted once per model
    h_t, (_, c_t, n_t, m_t) = slstm_cell_forward(x, state, params)
    jax.block_until_ready((h_t, c_t, n_t, m_t))
    h_r, (_, c_r, n_r, m_r) = slstm_cell_ref(x, state, W, B)
    for name, got, want in (("h", h_t, h_r), ("c", c_t, c_r),
                            ("n", n_t, n_r), ("m", m_t, m_r)):
        assert jnp.allclose(got, want, atol=atol, rtol=rtol), f"{name} mismatch vs reference"


if __name__ == "__main__":
    key = jax.random.PRNGKey(0)
    k_small, k_big = jax.random.split(key)

    # small shapes matching the module's toy configuration
    _run_and_check(k_small, batch=2, input_size=16, hidden_size=32, atol=2e-2, rtol=2e-2)

    # (8,128)-aligned shapes: exercises lane-aligned gate slices and unmasked stores
    _run_and_check(k_big, batch=8, input_size=128, hidden_size=128, atol=2e-2, rtol=2e-2)

    print("KERNEL_OK")
</pallas_src>

<mosaic_0001>
module attributes {stable_mosaic.version = 11 : i64} {
  func.func @_slstm_kernel(%arg0: i32, %arg1: memref<2x16xbf16, #tpu.memory_space<vmem>>, %arg2: memref<2x32xbf16, #tpu.memory_space<vmem>>, %arg3: memref<16x128xbf16, #tpu.memory_space<vmem>>, %arg4: memref<32x128xbf16, #tpu.memory_space<vmem>>, %arg5: memref<1x128xf32, #tpu.memory_space<vmem>>, %arg6: memref<2x32xf32, #tpu.memory_space<vmem>>, %arg7: memref<2x32xf32, #tpu.memory_space<vmem>>, %arg8: memref<2x32xf32, #tpu.memory_space<vmem>>, %arg9: memref<2x32xf32, #tpu.memory_space<vmem>>, %arg10: memref<2x32xf32, #tpu.memory_space<vmem>>, %arg11: memref<2x32xf32, #tpu.memory_space<vmem>>, %arg12: memref<2x32xf32, #tpu.memory_space<vmem>>) attributes {dimension_semantics = [#tpu.dimension_semantics<parallel>], iteration_bounds = array<i64: 1>, scalar_prefetch = 0 : i64, scratch_operands = 0 : i64, tpu.core_type = #tpu.core_type<tc>, window_params = [{transform_indices = @transform_0, window_bounds = array<i64: 2, 16>}, {transform_indices = @transform_1, window_bounds = array<i64: 2, 32>}, {pipeline_mode = #tpu.pipeline_mode<synchronous>, transform_indices = @transform_2, window_bounds = array<i64: 16, 128>}, {pipeline_mode = #tpu.pipeline_mode<synchronous>, transform_indices = @transform_3, window_bounds = array<i64: 32, 128>}, {pipeline_mode = #tpu.pipeline_mode<synchronous>, transform_indices = @transform_4, window_bounds = array<i64: 1, 128>}, {transform_indices = @transform_5, window_bounds = array<i64: 2, 32>}, {transform_indices = @transform_6, window_bounds = array<i64: 2, 32>}, {transform_indices = @transform_7, window_bounds = array<i64: 2, 32>}, {transform_indices = @transform_8, window_bounds = array<i64: 2, 32>}, {transform_indices = @transform_9, window_bounds = array<i64: 2, 32>}, {transform_indices = @transform_10, window_bounds = array<i64: 2, 32>}, {transform_indices = @transform_11, window_bounds = array<i64: 2, 32>}]} {
    %c0 = arith.constant 0 : index
    %c0_0 = arith.constant 0 : index
    %0 = vector.load %arg1[%c0, %c0_0] : memref<2x16xbf16, #tpu.memory_space<vmem>>, vector<2x16xbf16>
    %c0_1 = arith.constant 0 : index
    %c0_2 = arith.constant 0 : index
    %1 = vector.load %arg3[%c0_1, %c0_2] : memref<16x128xbf16, #tpu.memory_space<vmem>>, vector<16x128xbf16>
    %cst = arith.constant dense<0.000000e+00> : vector<2x128xf32>
    %2 = tpu.matmul %0, %1, %cst {dimension_numbers = #tpu.dot_dimension_numbers<[1], [0], [0], [1], [0, 0, 1, 1], [], []>} : vector<2x16xbf16>, vector<16x128xbf16>, vector<2x128xf32> -> vector<2x128xf32>
    %c0_3 = arith.constant 0 : index
    %c0_4 = arith.constant 0 : index
    %3 = vector.load %arg2[%c0_3, %c0_4] : memref<2x32xbf16, #tpu.memory_space<vmem>>, vector<2x32xbf16>
    %c0_5 = arith.constant 0 : index
    %c0_6 = arith.constant 0 : index
    %4 = vector.load %arg4[%c0_5, %c0_6] : memref<32x128xbf16, #tpu.memory_space<vmem>>, vector<32x128xbf16>
    %cst_7 = arith.constant dense<0.000000e+00> : vector<2x128xf32>
    %5 = tpu.matmul %3, %4, %cst_7 {dimension_numbers = #tpu.dot_dimension_numbers<[1], [0], [0], [1], [0, 0, 1, 1], [], []>} : vector<2x32xbf16>, vector<32x128xbf16>, vector<2x128xf32> -> vector<2x128xf32>
    %6 = arith.addf %2, %5 : vector<2x128xf32>
    %c0_8 = arith.constant 0 : index
    %c0_9 = arith.constant 0 : index
    %7 = vector.load %arg5[%c0_8, %c0_9] : memref<1x128xf32, #tpu.memory_space<vmem>>, vector<1x128xf32>
    %8 = vector.broadcast %7 : vector<1x128xf32> to vector<2x128xf32>
    %9 = arith.addf %6, %8 : vector<2x128xf32>
    %10 = vector.extract_strided_slice %9 {offsets = [0, 0], sizes = [2, 32], strides = [1, 1]} : vector<2x128xf32> to vector<2x32xf32>
    %11 = vector.extract_strided_slice %9 {offsets = [0, 32], sizes = [2, 32], strides = [1, 1]} : vector<2x128xf32> to vector<2x32xf32>
    %12 = vector.extract_strided_slice %9 {offsets = [0, 64], sizes = [2, 32], strides = [1, 1]} : vector<2x128xf32> to vector<2x32xf32>
    %13 = vector.extract_strided_slice %9 {offsets = [0, 96], sizes = [2, 32], strides = [1, 1]} : vector<2x128xf32> to vector<2x32xf32>
    %14 = math.tanh %10 : vector<2x32xf32>
    %15 = arith.negf %13 : vector<2x32xf32>
    %16 = math.exp %15 : vector<2x32xf32>
    %cst_10 = arith.constant 1.000000e+00 : f32
    %17 = vector.broadcast %cst_10 : f32 to vector<2x32xf32>
    %18 = arith.addf %17, %16 : vector<2x32xf32>
    %19 = arith.divf %17, %18 : vector<2x32xf32>
    %20 = math.absf %12 : vector<2x32xf32>
    %cst_11 = arith.constant 0.000000e+00 : f32
    %21 = vector.broadcast %cst_11 : f32 to vector<2x32xf32>
    %22 = arith.subf %21, %20 : vector<2x32xf32>
    %23 = math.exp %22 : vector<2x32xf32>
    %cst_12 = arith.constant 0.000000e+00 : f32
    %24 = vector.broadcast %cst_12 : f32 to vector<2x32xf32>
    %25 = arith.minimumf %12, %24 : vector<2x32xf32>
    %26 = math.log1p %23 : vector<2x32xf32>
    %27 = arith.subf %25, %26 : vector<2x32xf32>
    %cst_13 = arith.constant 0.000000e+00 : f32
    %28 = vector.broadcast %cst_13 : f32 to vector<2x32xf32>
    %29 = arith.cmpf oge, %12, %28 : vector<2x32xf32>
    %cst_14 = arith.constant 1.000000e+00 : f32
    %30 = vector.broadcast %cst_14 : f32 to vector<2x32xf32>
    %31 = arith.select %29, %30, %23 : vector<2x32xi1>, vector<2x32xf32>
    %cst_15 = arith.constant 1.000000e+00 : f32
    %32 = vector.broadcast %cst_15 : f32 to vector<2x32xf32>
    %33 = arith.addf %32, %23 : vector<2x32xf32>
    %34 = tpu.reciprocal %33 {approx = true} : vector<2x32xf32> -> vector<2x32xf32>
    %35 = arith.mulf %31, %34 : vector<2x32xf32>
    %c0_16 = arith.constant 0 : index
    %c0_17 = arith.constant 0 : index
    %36 = vector.load %arg8[%c0_16, %c0_17] : memref<2x32xf32, #tpu.memory_space<vmem>>, vector<2x32xf32>
    %37 = arith.addf %27, %36 : vector<2x32xf32>
    %38 = arith.maximumf %37, %11 : vector<2x32xf32>
    %39 = arith.subf %11, %38 : vector<2x32xf32>
    %40 = math.exp %39 : vector<2x32xf32>
    %c0_18 = arith.constant 0 : index
    %c0_19 = arith.constant 0 : index
    %41 = vector.load %arg6[%c0_18, %c0_19] : memref<2x32xf32, #tpu.memory_space<vmem>>, vector<2x32xf32>
    %42 = arith.mulf %35, %41 : vector<2x32xf32>
    %43 = arith.mulf %40, %14 : vector<2x32xf32>
    %44 = arith.addf %42, %43 : vector<2x32xf32>
    %c0_20 = arith.constant 0 : index
    %c0_21 = arith.constant 0 : index
    %45 = vector.load %arg7[%c0_20, %c0_21] : memref<2x32xf32, #tpu.memory_space<vmem>>, vector<2x32xf32>
    %46 = arith.mulf %35, %45 : vector<2x32xf32>
    %47 = arith.addf %46, %40 : vector<2x32xf32>
    %48 = tpu.reciprocal %47 {approx = true} : vector<2x32xf32> -> vector<2x32xf32>
    %49 = arith.mulf %44, %48 : vector<2x32xf32>
    %50 = arith.mulf %19, %49 : vector<2x32xf32>
    %c0_22 = arith.constant 0 : index
    %c0_23 = arith.constant 0 : index
    %51 = vector.load %arg9[%c0_22, %c0_23] : memref<2x32xf32, #tpu.memory_space<vmem>>, vector<2x32xf32>
    tpu.vector_store %arg9[%c0_22, %c0_23], %50 {strides = array<i32>} : memref<2x32xf32, #tpu.memory_space<vmem>>, vector<2x32xf32>,
    %c0_24 = arith.constant 0 : index
    %c0_25 = arith.constant 0 : index
    %52 = vector.load %arg10[%c0_24, %c0_25] : memref<2x32xf32, #tpu.memory_space<vmem>>, vector<2x32xf32>
    tpu.vector_store %arg10[%c0_24, %c0_25], %44 {strides = array<i32>} : memref<2x32xf32, #tpu.memory_space<vmem>>, vector<2x32xf32>,
    %c0_26 = arith.constant 0 : index
    %c0_27 = arith.constant 0 : index
    %53 = vector.load %arg11[%c0_26, %c0_27] : memref<2x32xf32, #tpu.memory_space<vmem>>, vector<2x32xf32>
    tpu.vector_store %arg11[%c0_26, %c0_27], %47 {strides = array<i32>} : memref<2x32xf32, #tpu.memory_space<vmem>>, vector<2x32xf32>,
    %c0_28 = arith.constant 0 : index
    %c0_29 = arith.constant 0 : index
    %54 = vector.load %arg12[%c0_28, %c0_29] : memref<2x32xf32, #tpu.memory_space<vmem>>, vector<2x32xf32>
    tpu.vector_store %arg12[%c0_28, %c0_29], %38 {strides = array<i32>} : memref<2x32xf32, #tpu.memory_space<vmem>>, vector<2x32xf32>,
    return
  }
  func.func @transform_0(%arg0: i32) -> (i32, i32) {
    %c0_i32 = arith.constant 0 : i32
    %c0_i32_0 = arith.constant 0 : i32
    return %arg0, %c0_i32 : i32, i32
  }
  func.func @transform_1(%arg0: i32) -> (i32, i32) {
    %c0_i32 = arith.constant 0 : i32
    %c0_i32_0 = arith.constant 0 : i32
    return %arg0, %c0_i32 : i32, i32
  }
  func.func @transform_2(%arg0: i32) -> (i32, i32) {
    %c0_i32 = arith.constant 0 : i32
    %c0_i32_0 = arith.constant 0 : i32
    %c0_i32_1 = arith.constant 0 : i32
    return %c0_i32, %c0_i32_0 : i32, i32
  }
  func.func @transform_3(%arg0: i32) -> (i32, i32) {
    %c0_i32 = arith.constant 0 : i32
    %c0_i32_0 = arith.constant 0 : i32
    %c0_i32_1 = arith.constant 0 : i32
    return %c0_i32, %c0_i32_0 : i32, i32
  }
  func.func @transform_4(%arg0: i32) -> (i32, i32) {
    %c0_i32 = arith.constant 0 : i32
    %c0_i32_0 = arith.constant 0 : i32
    %c0_i32_1 = arith.constant 0 : i32
    return %c0_i32, %c0_i32_0 : i32, i32
  }
  func.func @transform_5(%arg0: i32) -> (i32, i32) {
    %c0_i32 = arith.constant 0 : i32
    %c0_i32_0 = arith.constant 0 : i32
    return %arg0, %c0_i32 : i32, i32
  }
  func.func @transform_6(%arg0: i32) -> (i32, i32) {
    %c0_i32 = arith.constant 0 : i32
    %c0_i32_0 = arith.constant 0 : i32
    return %arg0, %c0_i32 : i32, i32
  }
  func.func @transform_7(%arg0: i32) -> (i32, i32) {
    %c0_i32 = arith.constant 0 : i32
    %c0_i32_0 = arith.constant 0 : i32
    return %arg0, %c0_i32 : i32, i32
  }
  func.func @transform_8(%arg0: i32) -> (i32, i32) {
    %c0_i32 = arith.constant 0 : i32
    %c0_i32_0 = arith.constant 0 : i32
    return %arg0, %c0_i32 : i32, i32
  }
  func.func @transform_9(%arg0: i32) -> (i32, i32) {
    %c0_i32 = arith.constant 0 : i32
    %c0_i32_0 = arith.constant 0 : i32
    return %arg0, %c0_i32 : i32, i32
  }
  func.func @transform_10(%arg0: i32) -> (i32, i32) {
    %c0_i32 = arith.constant 0 : i32
    %c0_i32_0 = arith.constant 0 : i32
    return %arg0, %c0_i32 : i32, i32
  }
  func.func @transform_11(%arg0: i32) -> (i32, i32) {
    %c0_i32 = arith.constant 0 : i32
    %c0_i32_0 = arith.constant 0 : i32
    return %arg0, %c0_i32 : i32, i32
  }
}

</mosaic_0001>

<bundles_post_ra>
// kernel: tpu_custom_call.1
= control target key start
LH: loop header
LB: loop body
LE: loop exit
PB: predicated region body
PF: predicated region fallthrough
CT: control target
= control target key end

     0   :  { %17 = vsyncpa [#allocation3], 0  ;;  %s741_s0 = inlined_call_operand.hbm [shape: bf16[2,16], index: 0, kind: input, shape index: {}]   ;;  %s742_s1 = inlined_call_operand.vmem [shape: bf16[2,32], index: 1, kind: input, shape index: {}]   ;;  %s743_s2 = inlined_call_operand.hbm [shape: bf16[16,128], index: 2, kind: input, shape index: {}]   ;;  %s744_s3 = inlined_call_operand.hbm [shape: bf16[32,128], index: 3, kind: input, shape index: {}]   ;;  %s745_s4 = inlined_call_operand.hbm [shape: f32[1,128], index: 4, kind: input, shape index: {}]   ;;  %s746_s5 = inlined_call_operand.vmem [shape: f32[2,32], index: 5, kind: input, shape index: {}]   ;;  %s747_s6 = inlined_call_operand.vmem [shape: f32[2,32], index: 6, kind: input, shape index: {}]   ;;  %s748_s7 = inlined_call_operand.vmem [shape: f32[2,32], index: 7, kind: input, shape index: {}]   ;;  %s749_s8 = inlined_call_operand.hbm [shape: f32[2,32], index: 8, kind: output, shape index: {0}]   ;;  %s750_s9 = inlined_call_operand.hbm [shape: f32[2,32], index: 9, kind: output, shape index: {1}]   ;;  %s751_s10 = inlined_call_operand.hbm [shape: f32[2,32], index: 10, kind: output, shape index: {2}]   ;;  %s752_s11 = inlined_call_operand.hbm [shape: f32[2,32], index: 11, kind: output, shape index: {3}]  }
   0x1   :  { %18 = vsyncpa [#allocation6], 0 }
   0x2   :  { %19 = vsyncpa [#allocation9], 0 }
   0x3   :  { %20 = vsyncpa [#allocation4], 0 }
   0x4   :  { %21 = vsyncpa [#allocation12], 0 }
   0x5   :  { %22 = vsyncpa [#allocation15], 0  ;;  %s598_s17 = smov [#allocation5]  }
   0x6   :  { %s40_s18 = sshll.u32 %s598_s17, 4  ;;  %s41_s18 = int_to_ptr.vmem [resolvable:$true] %s40_s18 }
   0x7   :  { %s434_s19 = scalar_lea.vmem %s41_s18, 128  ;;  %p439_p1 = scmp.lt.s32.totalorder %s41_s18, %s41_s18 }
   0x8   :  { %p435_p0 = scmp.ne.s32.totalorder %s41_s18, %s434_s19  ;;  %p440_p2 = scmp.lt.s32.totalorder %s434_s19, %s434_s19 }
   0xa   :  { %p441_p3 = por %p440_p2, %p439_p1 }
   0xc   :  { %p442_p4 = pnand %p441_p3, %p435_p0 }
   0xe   :  { %445 = shalt.err (!%p442_p4)
}
   0xf   :  { %s599_s20 = smov 64   ;;  %s600_s21 = smov 4  }
  0x10   :  { %46 = dma.hbm_to_vmem [thread:$0]  %s743_s2, 128, %s41_s18, [#allocation6], %s599_s20, %s599_s20, %s600_s21  }
  0x11   :  { %s601_s24 = smov [#allocation2]   ;;  %s602_s26 = smov [#allocation7]  }
  0x12   :  { %s29_s25 = sshll.u32 %s601_s24, 4  ;;  %s52_s27 = sshll.u32 %s602_s26, 4  ;;  %s30_s25 = int_to_ptr.vmem [resolvable:$true] %s29_s25  ;;  %s53_s27 = int_to_ptr.vmem [resolvable:$true] %s52_s27 }
  0x13   :  { %s454_s28 = scalar_lea.vmem %s30_s25, 16  ;;  %s458_s29 = scalar_lea.vmem %s30_s25, 32 }
  0x14   :  { %p455_p5 = scmp.ne.s32.totalorder %s30_s25, %s454_s28  ;;  %p459_p6 = scmp.lt.s32.totalorder %s30_s25, %s30_s25 }
  0x15   :  { %p460_p7 = scmp.lt.s32.totalorder %s458_s29, %s454_s28 }
  0x17   :  { %p461_p8 = por %p460_p7, %p459_p6 }
  0x19   :  { %p462_p9 = pnand %p461_p8, %p455_p5 }
  0x1b   :  { %465 = shalt.err (!%p462_p9)
}
  0x1c   :  { %32 = dma.hbm_to_vmem [thread:$0]  %s741_s0, 16, %s30_s25, [#allocation3]  }
  0x1d   :  { %s474_s13 = scalar_lea.vmem %s53_s27, 256  ;;  %p479_p11 = scmp.lt.s32.totalorder %s53_s27, %s53_s27 }
  0x1e   :  { %p475_p10 = scmp.ne.s32.totalorder %s53_s27, %s474_s13  ;;  %p480_p12 = scmp.lt.s32.totalorder %s474_s13, %s474_s13 }
  0x20   :  { %p481_p13 = por %p480_p12, %p479_p11 }
  0x22   :  { %p482_p0 = pnand %p481_p13, %p475_p10 }
  0x24   :  { %485 = shalt.err (!%p482_p0)
}
  0x25   :  { %58 = dma.hbm_to_vmem [thread:$0]  %s744_s3, 256, %s53_s27, [#allocation6], %s599_s20, %s599_s20, %s600_s21  }
  0x26   :  { %s603_s15 = smov [#allocation8]  }
  0x27   :  { %s65_s16 = sshll.u32 %s603_s15, 4  ;;  %s66_s16 = int_to_ptr.vmem [resolvable:$true] %s65_s16 }
  0x28   :  { %s494_s17 = scalar_lea.vmem %s66_s16, 16  ;;  %s498_s0 = scalar_lea.vmem %s66_s16, 32 }
  0x29   :  { %p495_p1 = scmp.ne.s32.totalorder %s66_s16, %s494_s17  ;;  %p499_p2 = scmp.lt.s32.totalorder %s66_s16, %s66_s16 }
  0x2a   :  { %p500_p3 = scmp.lt.s32.totalorder %s498_s0, %s494_s17 }
  0x2c   :  { %p501_p4 = por %p500_p3, %p499_p2 }
  0x2e   :  { %p502_p5 = pnand %p501_p4, %p495_p1 }
  0x30   :  { %505 = shalt.err (!%p502_p5)
}
  0x31   :  { %68 = dma.hbm_to_vmem [thread:$0]  %s745_s4, 16, %s66_s16, [#allocation9]  }
  0x32   :  { %586 = dma.done.wait [#allocation3], 16  }
  0x33   :  { %587 = vsyncadd [#allocation3], 4294967280 }
  0x34   :  { %588 = dma.done.wait [#allocation6], 384  }
  0x35   :  { %589 = vsyncadd [#allocation6], 4294966912 }
  0x36   :  { %590 = dma.done.wait [#allocation9], 16  }
  0x37   :  { %591 = vsyncadd [#allocation9], 4294967280  ;;  %v604_v0 = vmov 0.0   ;;  %vm605_vm0 = vmmov 0   ;;  %v407_v1 = vld [vmem:[#allocation7 + $0x8] sm:$0xff]   ;;  %v408_v2 = vld [vmem:[#allocation5] sm:$0xff]  }
  0x38   :  { %379 = vmatprep.subr.bf16.mxu0 %v604_v0  ;;  %387 = vmatprep.subr.bf16.mxu1 %v604_v0  ;;  %v88_v3 = vld [vmem:[#allocation2] sm:$0x1]  ;;  %vm158_vm1 = vcmask 130048   ;;  %v409_v4 = vld [vmem:[#allocation7] sm:$0xff]   ;;  %vm108_vm2 = vcmask 261120   ;;  %vm293_vm5 = vcmask 254976  }
  0x39   :  { %389 = vmatprep.mubr.msk.bf16.mxu1 %vm605_vm0, %v604_v0  ;;  %383 = vmatprep.mubr.msk.bf16.mxu0 %vm605_vm0, %v604_v0  ;;  %v237_v5 = vld [vmem:[%s748_s7] sm:$0x3]  ;;  %v372_v10 = vld [vmem:[#allocation8] ss:$0 sm:$0xff]  ;;  %s606_s7 = smov 32  }
  0x3a   :  { %380 = vmatpush3.bf16.msra.mxu0 %v407_v1  ;;  %388 = vmatpush3.bf16.msra.mxu1 %v408_v2  ;;  %v91_v6 = vld [vmem:[%s742_s1] sm:$0x1] }
  0x3b   :  { %381 = vmatprep.subr.bf16.mxu0 %v604_v0  ;;  %239 = vrot.lane.b32.xlu0 %v237_v5, %s599_s20  ;;  %v271_v19 = vld [vmem:[%s747_s6] sm:$0x3]  ;;  %s608_s6 = smov [#allocation11]  }
  0x3c   :  { %v255_v22 = vld [vmem:[%s746_s5] sm:$0x3]  ;;  %s607_s5 = smov 96   ;;  %s325_s26 = sshll.u32 %s608_s6, 4  ;;  %s326_s26 = int_to_ptr.vmem [resolvable:$true] %s325_s26 }
  0x3d   :  { %390 = vmatmul.mubr.msk.bf16.vlgmr.msra.gmra.mxu1 %vm158_vm1, %v88_v3  ;;  %s506_s27 = scalar_lea.vmem %s326_s26, 32  ;;  %p511_p7 = scmp.lt.s32.totalorder %s326_s26, %s326_s26 }
  0x3e   :  { %382 = vmatpush3.bf16.msra.mxu0 %v409_v4  ;;  %p507_p6 = scmp.ne.s32.totalorder %s326_s26, %s506_s27  ;;  %p512_p8 = scmp.lt.s32.totalorder %s506_s27, %s506_s27 }
  0x40   :  { %p513_p9 = por %p512_p8, %p511_p7 }
  0x41   :  { %384 = vmatmul.mubr.msk.bf16.vlgmr.msra.gmra.mxu0 %vm108_vm2, %v91_v6 }
  0x42   :  { %p514_p10 = pnand %p513_p9, %p507_p6 }
  0xad   :  { %v240_v37 = vpop.permute.xlu0 %239 }
  0xfd   :  { %v196_v7 = vpop.f32.mrf.mxu1 }
  0xff   :  { %v391_v8 = vpop.f32.mrf.mxu1 }
 0x101   :  { %v146_v9 = vpop.f32.mrf.mxu0  ;;  %v199_v12 = vpop.f32.mrf.mxu1 }
 0x102   :  { %v197_v11 = vadd.f32 %v196_v7, %v146_v9 }
 0x103   :  { %v385_v13 = vpop.f32.mrf.mxu0  ;;  %v392_v15 = vpop.f32.mrf.mxu1 }
 0x104   :  { %v695_v14 = vadd.f32 %v372_v10, %v197_v11 }
 0x105   :  { %v149_v16 = vpop.f32.mrf.mxu0 }
 0x106   :  { %v217_v17 = vand.u32 2147483647, %v695_v14  ;;  %244 = vrot.lane.b32.xlu0 %v695_v14, %s606_s7  ;;  %vm232_vm3 = vcmp.ge.f32.partialorder %v695_v14, 0.0  ;;  %v221_v35 = vmin.f32 %v695_v14, 0.0  ;;  %v373_v58 = vmul.f32 -1.442695, %v695_v14 }
 0x107   :  { %v386_v18 = vpop.f32.mrf.mxu0 }
 0x108   :  { %v218_v20 = vsub.f32 0.0, %v217_v17 }
 0x10a   :  { %v219_v21 = vmul.f32 1.442695, %v218_v20  ;;  %273 = vrot.lane.b32.xlu0 %v271_v19, %s599_s20 }
 0x10c   :  { %410 = vpow2.f32 %v219_v21 }
 0x10e   :  { %257 = vrot.lane.b32.xlu0 %v255_v22, %s599_s20 }
 0x119   :  { %v411_v23 = vpop.eup %410 }
 0x11a   :  { %v222_v24 = vadd.f32 1.0, %v411_v23  ;;  %v233_v26 = vsel %vm232_vm3, 1.0, %v411_v23  ;;  %v225_v28 = vmul.f32 -0.5, %v411_v23  ;;  %v228_v31 = vand.u32 2147483647, %v411_v23 }
 0x11c   :  { %412 = vrcp.f32 %v222_v24  ;;  %v226_v30 = vadd.f32 1.0, %v225_v28  ;;  %vm229_vm4 = vcmp.lt.f32.partialorder %v228_v31, 0.0004427343 }
 0x11d   :  { %414 = vlog2.f32 %v222_v24 }
 0x11e   :  { %v227_v33 = vmul.f32 %v411_v23, %v226_v30  ;;  %416 = vtanh.f32 %v695_v14 }
 0x129   :  { %v413_v25 = vpop.eup %412 }
 0x12a   :  { %v236_v27 = vmul.f32 %v413_v25, %v233_v26  ;;  %v415_v29 = vpop.eup %414 }
 0x12b   :  { %v224_v32 = vmul.f32 0.6931472, %v415_v29  ;;  %v417_v41 = vpop.eup %416 }
 0x12d   :  { %v230_v34 = vsel %vm229_vm4, %v227_v33, %v224_v32 }
 0x12e   :  { %v231_v36 = vsub.f32 %v221_v35, %v230_v34 }
 0x130   :  { %v242_v38 = vadd.f32 %v240_v37, %v231_v36 }
 0x178   :  { %v245_v39 = vpop.permute.xlu0 %244 }
 0x179   :  { %v711_v40 = vmax.f32 %v242_v38, %v245_v39 }
 0x17b   :  { %249 = vrot.lane.b32.xlu1 %v711_v40, %s607_s5 }
 0x17c   :  { %v274_v48 = vpop.permute.xlu0 %273 }
 0x17d   :  { %v276_v49 = vmul.f32 %v274_v48, %v236_v27 }
 0x17f   :  { %262 = vrot.lane.b32.xlu1 %v417_v41, %s606_s7 }
 0x180   :  { %v258_v50 = vpop.permute.xlu0 %257 }
 0x181   :  { %v260_v53 = vmul.f32 %v258_v50, %v236_v27 }
 0x1ed   :  { %v250_v42 = vpop.permute.xlu1 %249 }
 0x1ee   :  { %v252_v43 = vsub.f32 %v695_v14, %v250_v42 }
 0x1f0   :  { %v253_v44 = vmul.f32 1.442695, %v252_v43 }
 0x1f1   :  { %v263_v46 = vpop.permute.xlu1 %262 }
 0x1f2   :  { %418 = vpow2.f32 %v253_v44 }
 0x1ff   :  { %v419_v45 = vpop.eup %418 }
 0x200   :  { %278 = vrot.lane.b32.xlu1 %v419_v45, %s606_s7  ;;  %v265_v47 = vmul.f32 %v419_v45, %v263_v46 }
 0x204   :  { %267 = vrot.lane.b32.xlu1 %v265_v47, %s606_s7 }
 0x272   :  { %v279_v51 = vpop.permute.xlu1 %278 }
 0x273   :  { %v281_v52 = vadd.f32 %v279_v51, %v276_v49 }
 0x275   :  { %420 = vrcp.f32 %v281_v52 }
 0x276   :  { %v268_v54 = vpop.permute.xlu1 %267  ;;  %422 = vpow2.f32 %v373_v58 }
 0x277   :  { %v270_v55 = vadd.f32 %v268_v54, %v260_v53 }
 0x279   :  { %296 = vrot.lane.b32.xlu1 %v270_v55, %s599_s20 }
 0x27d   :  { %301 = vrot.lane.b32.xlu1 %v281_v52, %s599_s20 }
 0x282   :  { %v421_v56 = vpop.eup %420 }
 0x283   :  { %v283_v57 = vmul.f32 %v421_v56, %v270_v55  ;;  %v423_v59 = vpop.eup %422 }
 0x284   :  { %v214_v60 = vadd.f32 1.0, %v423_v59 }
 0x285   :  { %285 = vrot.lane.b32.xlu0 %v283_v57, %s606_s7 }
 0x286   :  { %424 = vrcp.f32 %v214_v60 }
 0x2eb   :  { %v297_v61 = vpop.permute.xlu1 %296 }
 0x2ec   :  { %299 = vst.msk [vmem:[#allocation11] sm:$0x3] %vm293_vm5, %v297_v61 }
 0x2ef   :  { %v302_v62 = vpop.permute.xlu1 %301 }
 0x2f0   :  { %304 = vst.msk [vmem:[#allocation13] sm:$0x3] %vm293_vm5, %v302_v62 }
 0x2f1   :  { %517 = shalt.err (!%p514_p10)
}
 0x2f2   :  { %328 = dma.vmem_to_hbm [thread:$0]  %s326_s26, 32, %s750_s9, [#allocation12]  }
 0x2f3   :  { %s609_s30 = smov [#allocation13]  }
 0x2f4   :  { %s335_s12 = sshll.u32 %s609_s30, 4  ;;  %s336_s12 = int_to_ptr.vmem [resolvable:$true] %s335_s12 }
 0x2f5   :  { %s526_s13 = scalar_lea.vmem %s336_s12, 32  ;;  %p531_p12 = scmp.lt.s32.totalorder %s336_s12, %s336_s12 }
 0x2f6   :  { %p527_p11 = scmp.ne.s32.totalorder %s336_s12, %s526_s13  ;;  %p532_p13 = scmp.lt.s32.totalorder %s526_s13, %s526_s13 }
 0x2f8   :  { %p533_p0 = por %p532_p13, %p531_p12 }
 0x2fa   :  { %p534_p1 = pnand %p533_p0, %p527_p11 }
 0x2fc   :  { %537 = shalt.err (!%p534_p1)
}
 0x2fd   :  { %338 = dma.vmem_to_hbm [thread:$0]  %s336_s12, 32, %s751_s10, [#allocation12]   ;;  %v425_v63 = vpop.eup %424  ;;  %v286_v0 = vpop.permute.xlu0 %285 }
 0x2fe   :  { %v288_v1 = vmul.f32 %v425_v63, %v286_v0  ;;  %s610_s9 = smov [#allocation10]   ;;  %s611_s16 = smov [#allocation14]  }
 0x2ff   :  { %s315_s15 = sshll.u32 %s610_s9, 4  ;;  %s345_s17 = sshll.u32 %s611_s16, 4  ;;  %s316_s15 = int_to_ptr.vmem [resolvable:$true] %s315_s15  ;;  %s346_s17 = int_to_ptr.vmem [resolvable:$true] %s345_s17 }
 0x300   :  { %290 = vrot.lane.b32.xlu0 %v288_v1, %s606_s7  ;;  %s546_s0 = scalar_lea.vmem %s316_s15, 32  ;;  %p551_p3 = scmp.lt.s32.totalorder %s316_s15, %s316_s15 }
 0x301   :  { %p547_p2 = scmp.ne.s32.totalorder %s316_s15, %s546_s0  ;;  %p552_p4 = scmp.lt.s32.totalorder %s546_s0, %s546_s0 }
 0x303   :  { %p553_p5 = por %p552_p4, %p551_p3 }
 0x304   :  { %305 = vrot.lane.b32.xlu0 %v711_v40, %s599_s20 }
 0x305   :  { %p554_p6 = pnand %p553_p5, %p547_p2 }
 0x372   :  { %v291_v2 = vpop.permute.xlu0 %290 }
 0x373   :  { %294 = vst.msk [vmem:[#allocation10] sm:$0x3] %vm293_vm5, %v291_v2 }
 0x374   :  { %557 = shalt.err (!%p554_p6)
}
 0x375   :  { %318 = dma.vmem_to_hbm [thread:$0]  %s316_s15, 32, %s749_s8, [#allocation4]  }
 0x376   :  { %v306_v3 = vpop.permute.xlu0 %305  ;;  %s566_s20 = scalar_lea.vmem %s346_s17, 32  ;;  %p571_p8 = scmp.lt.s32.totalorder %s346_s17, %s346_s17 }
 0x377   :  { %308 = vst.msk [vmem:[#allocation14] sm:$0x3] %vm293_vm5, %v306_v3  ;;  %p567_p7 = scmp.ne.s32.totalorder %s346_s17, %s566_s20  ;;  %p572_p9 = scmp.lt.s32.totalorder %s566_s20, %s566_s20 }
 0x379   :  { %p573_p10 = por %p572_p9, %p571_p8 }
 0x37b   :  { %p574_p11 = pnand %p573_p10, %p567_p7 }
 0x37d   :  { %577 = shalt.err (!%p574_p11)
}
 0x37e   :  { %348 = dma.vmem_to_hbm [thread:$0]  %s346_s17, 32, %s752_s11, [#allocation15]  }
 0x37f   :  { %592 = dma.done.wait [#allocation4], 32  }
 0x380   :  { %593 = vsyncadd [#allocation4], 4294967264 }
 0x381   :  { %594 = dma.done.wait [#allocation12], 64  }
 0x382   :  { %595 = vsyncadd [#allocation12], 4294967232 }
 0x383   :  { %596 = dma.done.wait [#allocation15], 32  }
 0x384   :  { %597 = vsyncadd [#allocation15], 4294967264 }
 0x385   :  { %361 = vsyncpa [#allocation3], 1 }
 0x386   :  { %362 = vsyncpa [#allocation6], 1 }
 0x387   :  { %363 = vsyncpa [#allocation9], 1 }
 0x388   :  { %364 = vsyncpa [#allocation4], 1 }
 0x389   :  { %365 = vsyncpa [#allocation12], 1 }
 0x38a   :  { %366 = vsyncpa [#allocation15], 1 }

</bundles_post_ra>
